<compile_context>
chip_gen: v7x
topology: tpu7x:2x2x1
jax: 0.10.0
libtpu: 0.0.40
codegen_flags: <defaults>
</compile_context>

<pallas_src>
import functools

import jax
import jax.numpy as jnp
from jax import lax
from jax.experimental import pallas as pl
from jax.experimental.pallas import tpu as pltpu

F_IN = 6  # module in_features (== out_features, see TODO above)


def _linear_residual_kernel(x_ref, wt_ref, b_ref, o_ref, *, apply_relu, f_in):
    # x_ref : (tn, F) f32 row tile of x
    # wt_ref: (F, F)  f32 pre-transposed weight (in, out) -- VMEM resident
    # b_ref : (1, F)  f32 bias                            -- VMEM resident
    # o_ref : (tn, F) f32 output tile
    x = x_ref[...]
    wt = wt_ref[...]
    # Fused epilogue start: residual + bias (bias broadcast over rows).
    acc = x + b_ref[...]
    # K = 6 contraction as broadcast FMAs on the VPU (pure f32; compute is
    # fully hidden under the HBM DMA of x / out, so no MXU needed).
    for k in range(f_in):
        acc = acc + x[:, k:k + 1] * wt[k:k + 1, :]
    if apply_relu:
        acc = jnp.maximum(acc, 0.0)
    o_ref[...] = acc.astype(o_ref.dtype)


def prepare_params(weight, bias):
    """Pre-transpose the Linear parameters once (outside the hot path).

    weight: torch layout (out_features, in_features); bias: (out_features,)
    Returns (wt, b): (in, out) f32 weight and (1, out) f32 bias.
    """
    wt = jnp.asarray(weight, jnp.float32).T          # (in, out)
    b = jnp.asarray(bias, jnp.float32).reshape(1, -1)
    return wt, b


def linear_residual_relu(x, wt, b, output_activation=True, *,
                         tile_n=8192, small_n_fast_path=2048,
                         force_pallas=False):
    """relu(x @ W^T + b + x) (relu optional), row-tiled Pallas kernel."""
    n, f = x.shape

    # Small-N fast path: for the module's nominal tiny shapes a pallas_call
    # launch is pure overhead; plain XLA (f32-precision dot) is faster.
    if (n < small_n_fast_path) and not force_pallas:
        v = jnp.dot(x, wt, precision=lax.Precision.HIGHEST) + b + x
        return jnp.maximum(v, 0.0) if output_activation else v

    # Row tile: either the full row count (always a legal block shape) or a
    # large multiple of 8; no row padding -- Pallas masks the ragged tail.
    tn = n if n <= tile_n else int(tile_n)
    grid = (pl.cdiv(n, tn),)

    kernel = functools.partial(_linear_residual_kernel,
                               apply_relu=bool(output_activation), f_in=f)
    return pl.pallas_call(
        kernel,
        out_shape=jax.ShapeDtypeStruct((n, f), x.dtype),
        grid=grid,
        in_specs=[
            pl.BlockSpec((tn, f), lambda i: (i, 0)),   # x: streamed row tiles
            pl.BlockSpec((f, f), lambda i: (0, 0)),    # weight: resident
            pl.BlockSpec((1, f), lambda i: (0, 0)),    # bias: resident
        ],
        out_specs=pl.BlockSpec((tn, f), lambda i: (i, 0)),
        compiler_params=pltpu.CompilerParams(
            dimension_semantics=("parallel",)),
    )(x, wt, b)


if __name__ == "__main__":
    key = jax.random.PRNGKey(0)
    k_x, k_w, k_b, k_big = jax.random.split(key, 4)

    N, F = 1, F_IN                      # module's nominal input shape (1, 6)
    x1 = jax.random.normal(k_x, (N, F), dtype=jnp.float32)

    # Deterministic "Linear" parameters (torch convention: weight (out, in)).
    bound = 1.0 / (F ** 0.5)
    weight = jax.random.uniform(k_w, (F, F), minval=-bound, maxval=bound,
                                dtype=jnp.float32)
    bias = jax.random.uniform(k_b, (F,), minval=-bound, maxval=bound,
                              dtype=jnp.float32)

    wt, b = prepare_params(weight, bias)   # done once, reused per call

    # Exact f32 reference (no MXU / precision ambiguity): elementwise contraction.
    def ref_fn(x, apply_relu=True):
        v = (x[:, :, None] * weight.T[None, :, :]).sum(axis=1) + bias + x
        return jnp.maximum(v, 0.0) if apply_relu else v

    # 1) Tiny nominal shape, forced through the Pallas kernel (relu branch).
    out = jax.block_until_ready(
        linear_residual_relu(x1, wt, b, True, force_pallas=True))
    assert jnp.allclose(out, ref_fn(x1), atol=1e-5, rtol=1e-5), \
        "mismatch vs f32 reference (pallas, relu)"

    # 2) no-relu branch also through the Pallas kernel.
    out_nr = jax.block_until_ready(
        linear_residual_relu(x1, wt, b, False, force_pallas=True))
    assert jnp.allclose(out_nr, ref_fn(x1, False), atol=1e-5, rtol=1e-5), \
        "mismatch vs f32 reference (pallas, no relu)"

    # 3) Large N: multi-step pipelined grid with a ragged (masked) last tile.
    xb = jax.random.normal(k_big, (20000, F), dtype=jnp.float32)
    out_b = jax.block_until_ready(linear_residual_relu(xb, wt, b, True))
    assert jnp.allclose(out_b, ref_fn(xb), atol=1e-5, rtol=1e-5), \
        "mismatch on gridded / ragged path"

    # 4) Small-N XLA fast path (no pallas launch) matches too.
    out_fp = jax.block_until_ready(linear_residual_relu(x1, wt, b, True))
    assert jnp.allclose(out_fp, ref_fn(x1), atol=1e-5, rtol=1e-5), \
        "mismatch on XLA fast path"

    print("KERNEL_OK")
</pallas_src>

<mosaic_0001>
module attributes {stable_mosaic.version = 11 : i64} {
  func.func @_linear_residual_kernel(%arg0: i32, %arg1: memref<1x6xf32, #tpu.memory_space<vmem>>, %arg2: memref<6x6xf32, #tpu.memory_space<vmem>>, %arg3: memref<1x6xf32, #tpu.memory_space<vmem>>, %arg4: memref<1x6xf32, #tpu.memory_space<vmem>>) attributes {dimension_semantics = [#tpu.dimension_semantics<parallel>], iteration_bounds = array<i64: 1>, scalar_prefetch = 0 : i64, scratch_operands = 0 : i64, tpu.core_type = #tpu.core_type<tc>, window_params = [{transform_indices = @transform_0, window_bounds = array<i64: 1, 6>}, {pipeline_mode = #tpu.pipeline_mode<synchronous>, transform_indices = @transform_1, window_bounds = array<i64: 6, 6>}, {pipeline_mode = #tpu.pipeline_mode<synchronous>, transform_indices = @transform_2, window_bounds = array<i64: 1, 6>}, {transform_indices = @transform_3, window_bounds = array<i64: 1, 6>}]} {
    %c0 = arith.constant 0 : index
    %c0_0 = arith.constant 0 : index
    %0 = vector.load %arg1[%c0, %c0_0] : memref<1x6xf32, #tpu.memory_space<vmem>>, vector<1x6xf32>
    %c0_1 = arith.constant 0 : index
    %c0_2 = arith.constant 0 : index
    %1 = vector.load %arg2[%c0_1, %c0_2] : memref<6x6xf32, #tpu.memory_space<vmem>>, vector<6x6xf32>
    %c0_3 = arith.constant 0 : index
    %c0_4 = arith.constant 0 : index
    %2 = vector.load %arg3[%c0_3, %c0_4] : memref<1x6xf32, #tpu.memory_space<vmem>>, vector<1x6xf32>
    %3 = arith.addf %0, %2 : vector<1x6xf32>
    %4 = vector.extract_strided_slice %0 {offsets = [0, 0], sizes = [1, 1], strides = [1, 1]} : vector<1x6xf32> to vector<1x1xf32>
    %5 = vector.extract_strided_slice %1 {offsets = [0, 0], sizes = [1, 6], strides = [1, 1]} : vector<6x6xf32> to vector<1x6xf32>
    %6 = vector.broadcast %4 : vector<1x1xf32> to vector<1x6xf32>
    %7 = arith.mulf %6, %5 : vector<1x6xf32>
    %8 = arith.addf %3, %7 : vector<1x6xf32>
    %9 = vector.extract_strided_slice %0 {offsets = [0, 1], sizes = [1, 1], strides = [1, 1]} : vector<1x6xf32> to vector<1x1xf32>
    %10 = vector.extract_strided_slice %1 {offsets = [1, 0], sizes = [1, 6], strides = [1, 1]} : vector<6x6xf32> to vector<1x6xf32>
    %11 = vector.broadcast %9 : vector<1x1xf32> to vector<1x6xf32>
    %12 = arith.mulf %11, %10 : vector<1x6xf32>
    %13 = arith.addf %8, %12 : vector<1x6xf32>
    %14 = vector.extract_strided_slice %0 {offsets = [0, 2], sizes = [1, 1], strides = [1, 1]} : vector<1x6xf32> to vector<1x1xf32>
    %15 = vector.extract_strided_slice %1 {offsets = [2, 0], sizes = [1, 6], strides = [1, 1]} : vector<6x6xf32> to vector<1x6xf32>
    %16 = vector.broadcast %14 : vector<1x1xf32> to vector<1x6xf32>
    %17 = arith.mulf %16, %15 : vector<1x6xf32>
    %18 = arith.addf %13, %17 : vector<1x6xf32>
    %19 = vector.extract_strided_slice %0 {offsets = [0, 3], sizes = [1, 1], strides = [1, 1]} : vector<1x6xf32> to vector<1x1xf32>
    %20 = vector.extract_strided_slice %1 {offsets = [3, 0], sizes = [1, 6], strides = [1, 1]} : vector<6x6xf32> to vector<1x6xf32>
    %21 = vector.broadcast %19 : vector<1x1xf32> to vector<1x6xf32>
    %22 = arith.mulf %21, %20 : vector<1x6xf32>
    %23 = arith.addf %18, %22 : vector<1x6xf32>
    %24 = vector.extract_strided_slice %0 {offsets = [0, 4], sizes = [1, 1], strides = [1, 1]} : vector<1x6xf32> to vector<1x1xf32>
    %25 = vector.extract_strided_slice %1 {offsets = [4, 0], sizes = [1, 6], strides = [1, 1]} : vector<6x6xf32> to vector<1x6xf32>
    %26 = vector.broadcast %24 : vector<1x1xf32> to vector<1x6xf32>
    %27 = arith.mulf %26, %25 : vector<1x6xf32>
    %28 = arith.addf %23, %27 : vector<1x6xf32>
    %29 = vector.extract_strided_slice %0 {offsets = [0, 5], sizes = [1, 1], strides = [1, 1]} : vector<1x6xf32> to vector<1x1xf32>
    %30 = vector.extract_strided_slice %1 {offsets = [5, 0], sizes = [1, 6], strides = [1, 1]} : vector<6x6xf32> to vector<1x6xf32>
    %31 = vector.broadcast %29 : vector<1x1xf32> to vector<1x6xf32>
    %32 = arith.mulf %31, %30 : vector<1x6xf32>
    %33 = arith.addf %28, %32 : vector<1x6xf32>
    %cst = arith.constant 0.000000e+00 : f32
    %34 = vector.broadcast %cst : f32 to vector<1x6xf32>
    %35 = arith.maximumf %33, %34 : vector<1x6xf32>
    %c0_5 = arith.constant 0 : index
    %c0_6 = arith.constant 0 : index
    %36 = vector.load %arg4[%c0_5, %c0_6] : memref<1x6xf32, #tpu.memory_space<vmem>>, vector<1x6xf32>
    tpu.vector_store %arg4[%c0_5, %c0_6], %35 {strides = array<i32>} : memref<1x6xf32, #tpu.memory_space<vmem>>, vector<1x6xf32>,
    return
  }
  func.func @transform_0(%arg0: i32) -> (i32, i32) {
    %c0_i32 = arith.constant 0 : i32
    %c0_i32_0 = arith.constant 0 : i32
    return %arg0, %c0_i32 : i32, i32
  }
  func.func @transform_1(%arg0: i32) -> (i32, i32) {
    %c0_i32 = arith.constant 0 : i32
    %c0_i32_0 = arith.constant 0 : i32
    %c0_i32_1 = arith.constant 0 : i32
    return %c0_i32, %c0_i32_0 : i32, i32
  }
  func.func @transform_2(%arg0: i32) -> (i32, i32) {
    %c0_i32 = arith.constant 0 : i32
    %c0_i32_0 = arith.constant 0 : i32
    %c0_i32_1 = arith.constant 0 : i32
    return %c0_i32, %c0_i32_0 : i32, i32
  }
  func.func @transform_3(%arg0: i32) -> (i32, i32) {
    %c0_i32 = arith.constant 0 : i32
    %c0_i32_0 = arith.constant 0 : i32
    return %arg0, %c0_i32 : i32, i32
  }
}

</mosaic_0001>

<bundles_post_ra>
// kernel: tpu_custom_call.1
= control target key start
LH: loop header
LB: loop body
LE: loop exit
PB: predicated region body
PF: predicated region fallthrough
CT: control target
= control target key end

     0   :  { %8 = vsyncpa [#allocation3], 0  ;;  %s367_s0 = inlined_call_operand.hbm [shape: f32[1,6], index: 0, kind: input, shape index: {}]   ;;  %s368_s1 = inlined_call_operand.hbm [shape: f32[6,6], index: 1, kind: input, shape index: {}]   ;;  %s369_s2 = inlined_call_operand.vmem [shape: f32[1,6], index: 2, kind: input, shape index: {}]   ;;  %s370_s3 = inlined_call_operand.hbm [shape: f32[1,6], index: 3, kind: output, shape index: {}]  }
   0x1   :  { %9 = vsyncpa [#allocation6], 0 }
   0x2   :  { %10 = vsyncpa [#allocation4], 0  ;;  %s298_s12 = smov [#allocation2]   ;;  %s299_s14 = smov [#allocation5]  }
   0x3   :  { %s17_s13 = sshll.u32 %s298_s12, 4  ;;  %s27_s15 = sshll.u32 %s299_s14, 4  ;;  %s18_s13 = int_to_ptr.vmem [resolvable:$true] %s17_s13  ;;  %s28_s15 = int_to_ptr.vmem [resolvable:$true] %s27_s15 }
   0x4   :  { %s226_s18 = scalar_lea.hbm %s367_s0, 16 }
   0x5   :  { %p227_p0 = scmp.ne.s32.totalorder %s367_s0, %s226_s18  ;;  %p230_p1 = scmp.lt.u32.totalorder %s226_s18, %s367_s0 }
   0x7   :  { %p232_p2 = pnand %p230_p1, %p227_p0 }
   0x9   :  { %235 = shalt.err (!%p232_p2)
}
   0xa   :  { %s236_s23 = scalar_lea.vmem %s18_s13, 16  ;;  %s240_s24 = scalar_lea.vmem %s18_s13, 32 }
   0xb   :  { %p237_p3 = scmp.ne.s32.totalorder %s18_s13, %s236_s23  ;;  %p241_p4 = scmp.lt.s32.totalorder %s18_s13, %s18_s13 }
   0xc   :  { %p242_p5 = scmp.lt.s32.totalorder %s240_s24, %s236_s23 }
   0xe   :  { %p243_p6 = por %p242_p5, %p241_p4 }
  0x10   :  { %p244_p7 = pnand %p243_p6, %p237_p3 }
  0x12   :  { %247 = shalt.err (!%p244_p7)
}
  0x13   :  { %20 = dma.hbm_to_vmem [thread:$0]  %s367_s0, 16, %s18_s13, [#allocation3]  }
  0x14   :  { %s248_s29 = scalar_lea.hbm %s368_s1, 128 }
  0x15   :  { %p249_p8 = scmp.ne.s32.totalorder %s368_s1, %s248_s29  ;;  %p252_p9 = scmp.lt.u32.totalorder %s248_s29, %s368_s1 }
  0x17   :  { %p254_p10 = pnand %p252_p9, %p249_p8 }
  0x19   :  { %257 = shalt.err (!%p254_p10)
}
  0x1a   :  { %s258_s7 = scalar_lea.vmem %s28_s15, 128  ;;  %p263_p12 = scmp.lt.s32.totalorder %s28_s15, %s28_s15 }
  0x1b   :  { %p259_p11 = scmp.ne.s32.totalorder %s28_s15, %s258_s7  ;;  %p264_p13 = scmp.lt.s32.totalorder %s258_s7, %s258_s7 }
  0x1d   :  { %p265_p0 = por %p264_p13, %p263_p12 }
  0x1f   :  { %p266_p1 = pnand %p265_p0, %p259_p11 }
  0x21   :  { %269 = shalt.err (!%p266_p1)
}
  0x22   :  { %30 = dma.hbm_to_vmem [thread:$0]  %s368_s1, 128, %s28_s15, [#allocation6]  }
  0x23   :  { %292 = dma.done.wait [#allocation3], 16  }
  0x24   :  { %293 = vsyncadd [#allocation3], 4294967280 }
  0x25   :  { %294 = dma.done.wait [#allocation6], 128  }
  0x26   :  { %295 = vsyncadd [#allocation6], 4294967168  ;;  %v300_v0 = vmov 3   ;;  %v301_v1 = vmov 1   ;;  %v39_v2 = vld [vmem:[#allocation2] sm:$0x1]  ;;  %v48_v7 = vlaneseq }
  0x27   :  { %222 = vset.pattern.permute.xlu1 %v300_v0  ;;  %220 = vset.pattern.permute.xlu0 %v301_v1  ;;  %v302_v3 = vmov 0   ;;  %v303_v4 = vmov 2   ;;  %v304_v5 = vmov 4   ;;  %v305_v6 = vmov 5   ;;  %v40_v13 = vld [vmem:[#allocation5] sm:$0x3f] }
  0x28   :  { %109 = vperm.xlu1 %222, %v39_v2   ;;  %55 = vperm.xlu0 %220, %v39_v2   ;;  %v49_v8 = vshrl.u32 %v48_v7, 7  ;;  %v306_v9 = vmov 1966171168   ;;  %v41_v21 = vld [vmem:[%s369_s2] sm:$0x1]  ;;  %s307_s2 = smov [#allocation7]  }
  0x29   :  { %v65_v10 = vunpack.c.l.s4 %v306_v9  ;;  %v42_v26 = vadd.f32 %v41_v21, %v39_v2  ;;  %s200_s10 = sshll.u32 %s307_s2, 4  ;;  %vm192_vm0 = vcmask 40960   ;;  %s201_s10 = int_to_ptr.vmem [resolvable:$true] %s200_s10 }
  0x2a   :  { %v50_v11 = vsub.s32 0, %v49_v8  ;;  %s270_s11 = scalar_lea.vmem %s201_s10, 16  ;;  %s274_s12 = scalar_lea.vmem %s201_s10, 32 }
  0x2b   :  { %v66_v12 = vunpack.c.0.s8 %v65_v10  ;;  %p271_p2 = scmp.ne.s32.totalorder %s201_s10, %s270_s11  ;;  %p275_p3 = scmp.lt.s32.totalorder %s201_s10, %s201_s10 }
  0x2c   :  { %223 = vset.pattern.permute.xlu1 %v302_v3  ;;  %221 = vset.pattern.permute.xlu0 %v303_v4  ;;  %p276_p4 = scmp.lt.s32.totalorder %s274_s12, %s270_s11 }
  0x2d   :  { %45 = vperm.xlu1 %223, %v39_v2   ;;  %82 = vperm.xlu0 %221, %v39_v2   ;;  %v69_v16 = vsub.s32 %v66_v12, %v49_v8 }
  0x2e   :  { %p277_p5 = por %p276_p4, %p275_p3 }
  0x30   :  { %p278_p6 = pnand %p277_p5, %p271_p2 }
  0x31   :  { %224 = vset.pattern.permute.xlu1 %v304_v5  ;;  %225 = vset.pattern.permute.xlu0 %v305_v6 }
  0x32   :  { %137 = vperm.xlu1 %224, %v39_v2   ;;  %164 = vperm.xlu0 %225, %v39_v2  }
  0xa7   :  { %v110_v14 = vpop.permute.xlu1 %109  ;;  %v56_v15 = vpop.permute.xlu0 %55 }
  0xa8   :  { %v115_v17 = vrot.slane %v110_v14, %v50_v11  ;;  %v61_v18 = vrot.slane %v56_v15, %v50_v11 }
  0xaa   :  { %v116_v19 = vmul.f32 %v115_v17, %v40_v13  ;;  %v62_v20 = vmul.f32 %v61_v18, %v40_v13 }
  0xac   :  { %v124_v22 = vrot.slane %v116_v19, %v69_v16  ;;  %v70_v23 = vrot.slane %v62_v20, %v69_v16  ;;  %v46_v24 = vpop.permute.xlu1 %45  ;;  %v83_v25 = vpop.permute.xlu0 %82 }
  0xad   :  { %v51_v27 = vrot.slane %v46_v24, %v50_v11  ;;  %v88_v28 = vrot.slane %v83_v25, %v50_v11 }
  0xae   :  { %v71_v29 = vcombine.high %v70_v23, %v70_v23  ;;  %v125_v30 = vcombine.high %v124_v22, %v124_v22 }
  0xaf   :  { %v52_v31 = vmul.f32 %v51_v27, %v40_v13  ;;  %v89_v32 = vmul.f32 %v88_v28, %v40_v13 }
  0xb0   :  { %v78_v33 = vrot.slane %v71_v29, %v69_v16  ;;  %v132_v40 = vrot.slane %v125_v30, %v69_v16 }
  0xb1   :  { %v53_v34 = vadd.f32 %v52_v31, %v42_v26  ;;  %v97_v35 = vrot.slane %v89_v32, %v69_v16  ;;  %v138_v36 = vpop.permute.xlu1 %137  ;;  %v165_v37 = vpop.permute.xlu0 %164 }
  0xb2   :  { %v143_v38 = vrot.slane %v138_v36, %v50_v11  ;;  %v170_v39 = vrot.slane %v165_v37, %v50_v11  ;;  %v133_v48 = vcombine.high %v132_v40, %v132_v40 }
  0xb3   :  { %v104_v41 = vrot.slane %v97_v35, %v69_v16  ;;  %v80_v44 = vadd.f32 %v78_v33, %v53_v34 }
  0xb4   :  { %v144_v42 = vmul.f32 %v143_v38, %v40_v13  ;;  %v171_v43 = vmul.f32 %v170_v39, %v40_v13 }
  0xb5   :  { %v105_v45 = vcombine.high %v104_v41, %v104_v41 }
  0xb6   :  { %v146_v46 = vcombine.high %v144_v42, %v144_v42  ;;  %v173_v47 = vcombine.high %v171_v43, %v171_v43 }
  0xb7   :  { %v107_v49 = vadd.f32 %v105_v45, %v80_v44 }
  0xb8   :  { %v153_v50 = vrot.slane %v146_v46, %v69_v16  ;;  %v180_v51 = vrot.slane %v173_v47, %v69_v16 }
  0xb9   :  { %v135_v52 = vadd.f32 %v133_v48, %v107_v49 }
  0xba   :  { %v160_v53 = vrot.slane %v153_v50, %v69_v16  ;;  %v181_v54 = vcombine.high %v180_v51, %v180_v51 }
  0xbc   :  { %v188_v55 = vrot.slane %v181_v54, %v69_v16  ;;  %v162_v56 = vadd.f32 %v160_v53, %v135_v52 }
  0xbe   :  { %v190_v57 = vadd.f32 %v188_v55, %v162_v56 }
  0xc0   :  { %v191_v58 = vmax.f32 %v190_v57, 0.0 }
  0xc2   :  { %193 = vst.msk [vmem:[#allocation7] sm:$0x1] %vm192_vm0, %v191_v58 }
  0xc3   :  { %281 = shalt.err (!%p278_p6)
}
  0xc4   :  { %s282_s15 = scalar_lea.hbm %s370_s3, 16 }
  0xc5   :  { %p283_p7 = scmp.ne.s32.totalorder %s370_s3, %s282_s15  ;;  %p286_p8 = scmp.lt.u32.totalorder %s282_s15, %s370_s3 }
  0xc7   :  { %p288_p9 = pnand %p286_p8, %p283_p7 }
  0xc9   :  { %291 = shalt.err (!%p288_p9)
}
  0xca   :  { %203 = dma.vmem_to_hbm [thread:$0]  %s201_s10, 16, %s370_s3, [#allocation4]  }
  0xcb   :  { %296 = dma.done.wait [#allocation4], 16  }
  0xcc   :  { %297 = vsyncadd [#allocation4], 4294967280 }
  0xcd   :  { %207 = vsyncpa [#allocation3], 1 }
  0xce   :  { %208 = vsyncpa [#allocation6], 1 }
  0xcf   :  { %209 = vsyncpa [#allocation4], 1 }

</bundles_post_ra>
